<compile_context>
chip_gen: v7x
topology: tpu7x:2x2x1
jax: 0.10.0
libtpu: 0.0.40
codegen_flags: <defaults>
</compile_context>

<pallas_src>
import functools

import jax
import jax.numpy as jnp
from jax.experimental import pallas as pl
from jax.experimental.pallas import tpu as pltpu

IN_DIM = 3
H1 = 512
H2 = 128
OUT_DIM = 2
W3_PAD = 128          # lane-padded width of the head weight (MXU operand only)
BN_EPS = 1e-5


def _round8(n):
    return ((n + 7) // 8) * 8


def _swish_sigmoid(x):
    # sigmoid(x) == 0.5 * (tanh(0.5 * x) + 1): single EUP transcendental
    # instead of exp + divide.
    return 0.5 * jnp.tanh(0.5 * x) + 0.5


def tabular_kernel(meta_ref,
                   w1_ref, shift1_ref,
                   w2_ref, shift2_ref,
                   w3_ref, b3_ref,
                   x_out_ref, y_out_ref, *, ew_dtype):
    # ---- Linear(3 -> 512) + folded BatchNorm: K=3 -> 3 broadcast FMAs on the
    #      VPU (an MXU tile would be wasted). w1 already has the BN scale folded
    #      in; shift1 = b1*scale + shift.
    m = meta_ref[...]                          # (TB, IN_DIM) f32
    w1 = w1_ref[...]                           # (IN_DIM, H1) f32
    h_pre = shift1_ref[...] + m[:, 0:1] * w1[0:1, :]
    for k in range(1, IN_DIM):                 # static unroll, IN_DIM == 3
        h_pre = h_pre + m[:, k:k + 1] * w1[k:k + 1, :]
    # Swish in ew_dtype (bf16 on v6e/v7x, f32 on v5e); result feeds the bf16 MXU.
    hc = h_pre.astype(ew_dtype)
    h = (hc * _swish_sigmoid(hc)).astype(jnp.bfloat16)
    # TODO(synk): Dropout(p=0.5) is identity in eval mode; no RNG mask applied.

    # ---- Linear(512 -> 128) + folded BatchNorm + Swish (bf16 MXU, f32 acc) ----
    h2_pre = jnp.dot(h, w2_ref[...],
                     preferred_element_type=jnp.float32) + shift2_ref[...]
    # tanh (the EUP work) in ew_dtype; keep the final multiply in f32 since h2
    # is a returned output of the module.
    sig2 = _swish_sigmoid(h2_pre.astype(ew_dtype)).astype(jnp.float32)
    h2 = h2_pre * sig2
    x_out_ref[...] = h2

    # ---- head: Linear(128 -> 2). MXU matmul against the 128-lane-padded w3
    #      (stays in VMEM), but only OUT_DIM lanes are written back to HBM.
    y_full = jnp.dot(h2.astype(jnp.bfloat16), w3_ref[...],
                     preferred_element_type=jnp.float32) + b3_ref[...]
    y_out_ref[...] = y_full[:, :OUT_DIM]


def fold_params(params):
    """One-time constant fold (not per call): BN(eval) scale into weight columns,
    Linear bias into the BN shift; head weight/bias zero-padded to 128 lanes for
    the MXU (only OUT_DIM lanes ever reach HBM)."""
    s1, sh1 = params["bn1_scale"], params["bn1_shift"]
    s2, sh2 = params["bn2_scale"], params["bn2_shift"]

    w1f = params["w1"] * s1                                   # (IN_DIM, H1) f32
    shift1 = params["b1"] * s1 + sh1                          # (1, H1) f32

    w2f = (params["w2"] * s2).astype(jnp.bfloat16)            # (H1, H2) bf16
    shift2 = params["b2"] * s2 + sh2                          # (1, H2) f32

    w3p = jnp.zeros((H2, W3_PAD), jnp.float32)
    w3p = w3p.at[:, :OUT_DIM].set(params["w3"]).astype(jnp.bfloat16)
    b3p = jnp.zeros((1, W3_PAD), jnp.float32).at[:, :OUT_DIM].set(params["b3"])

    return {"w1": w1f, "shift1": shift1,
            "w2": w2f, "shift2": shift2,
            "w3": w3p, "b3": b3p}


def _default_elementwise_dtype():
    """bf16 elementwise only where the VPU/EUP support it (v6e / v7x)."""
    try:
        kind = jax.devices()[0].device_kind.lower()
    except Exception:
        return jnp.float32
    if "v6" in kind or "v7" in kind:
        return jnp.bfloat16
    return jnp.float32            # v5e and older: no bf16 VPU/EUP


def _choose_tb(B, tb_max=2048):
    """Batch tile: multiple of 8, large (amortize grid-step overhead), but with
    >= 2 grid steps (preferably an even count) when the batch allows it, so the
    v7x megacore can shard the 'parallel' batch axis across both TensorCores."""
    rows = _round8(max(B, 1))
    tb = min(tb_max, rows)
    if rows > 8:
        tb = min(tb, _round8((rows + 1) // 2))      # at least 2 grid steps
    steps = -(-rows // tb)
    if steps > 1 and steps % 2 == 1:                # prefer an even step count
        tb = _round8(-(-rows // (steps + 1)))
        tb = max(8, tb)
    return max(8, tb)


def tabular_forward(meta, fused, *, tb_max=2048, ew_dtype=None):
    if ew_dtype is None:
        ew_dtype = _default_elementwise_dtype()

    B = meta.shape[0]
    tb = _choose_tb(B, tb_max)
    steps = -(-_round8(max(B, 1)) // tb)
    Bp = steps * tb
    if Bp != B:
        meta = jnp.pad(meta, ((0, Bp - B), (0, 0)))

    def tiled(shape):      # streamed along the batch grid axis
        return pl.BlockSpec(shape, lambda i: (i, 0))

    def resident(shape):   # fetched once, stays in VMEM for every batch tile
        return pl.BlockSpec(shape, lambda i: (0, 0))

    args = (meta,
            fused["w1"], fused["shift1"],
            fused["w2"], fused["shift2"],
            fused["w3"], fused["b3"])
    in_specs = [tiled((tb, IN_DIM))] + [resident(a.shape) for a in args[1:]]

    bytes_in = sum(int(a.size) * a.dtype.itemsize for a in args)
    bytes_out = Bp * H2 * 4 + Bp * OUT_DIM * 4
    cost = pl.CostEstimate(
        flops=2 * Bp * (IN_DIM * H1 + H1 * H2 + H2 * OUT_DIM),
        transcendentals=Bp * (H1 + H2),          # one tanh per swish element
        bytes_accessed=bytes_in + bytes_out,
    )

    kernel = functools.partial(tabular_kernel, ew_dtype=ew_dtype)

    x_pad, y_pad = pl.pallas_call(
        kernel,
        out_shape=(
            jax.ShapeDtypeStruct((Bp, H2), jnp.float32),
            jax.ShapeDtypeStruct((Bp, OUT_DIM), jnp.float32),
        ),
        grid=(steps,),
        in_specs=in_specs,
        out_specs=(tiled((tb, H2)), tiled((tb, OUT_DIM))),
        compiler_params=pltpu.CompilerParams(
            dimension_semantics=("parallel",),   # megacore batch sharding on v7x
            vmem_limit_bytes=32 << 20,
        ),
        cost_estimate=cost,
    )(*args)

    return x_pad[:B], y_pad[:B]


def make_params(key):
    ks = jax.random.split(key, 14)

    def linear(kw, kb, fan_in, fan_out):
        bound = 1.0 / jnp.sqrt(fan_in)
        w = jax.random.uniform(kw, (fan_in, fan_out), jnp.float32, -bound, bound)
        b = jax.random.uniform(kb, (1, fan_out), jnp.float32, -bound, bound)
        return w, b

    w1, b1 = linear(ks[0], ks[1], IN_DIM, H1)
    w2, b2 = linear(ks[2], ks[3], H1, H2)
    w3, b3 = linear(ks[4], ks[5], H2, OUT_DIM)

    def bn_fold(kg, kb, km, kv, dim):
        gamma = 1.0 + 0.01 * jax.random.normal(kg, (1, dim), jnp.float32)
        beta = 0.01 * jax.random.normal(kb, (1, dim), jnp.float32)
        running_mean = 0.01 * jax.random.normal(km, (1, dim), jnp.float32)
        running_var = 1.0 + 0.01 * jax.random.uniform(kv, (1, dim), jnp.float32)
        scale = gamma / jnp.sqrt(running_var + BN_EPS)
        shift = beta - running_mean * scale
        return scale, shift

    bn1_scale, bn1_shift = bn_fold(ks[6], ks[7], ks[8], ks[9], H1)
    bn2_scale, bn2_shift = bn_fold(ks[10], ks[11], ks[12], ks[13], H2)

    return {
        "w1": w1, "b1": b1, "bn1_scale": bn1_scale, "bn1_shift": bn1_shift,
        "w2": w2, "b2": b2, "bn2_scale": bn2_scale, "bn2_shift": bn2_shift,
        "w3": w3, "b3": b3,
    }


def _ref_forward(meta, p):
    """Pure-JAX f32 reference (eval-mode BN, Dropout = identity)."""
    def swish(v):
        return v * jax.nn.sigmoid(v)
    h = (meta @ p["w1"] + p["b1"]) * p["bn1_scale"] + p["bn1_shift"]
    h = swish(h)
    x = (h @ p["w2"] + p["b2"]) * p["bn2_scale"] + p["bn2_shift"]
    x = swish(x)
    y = x @ p["w3"] + p["b3"]
    return x, y


if __name__ == "__main__":
    key = jax.random.PRNGKey(0)
    k_param, k_data = jax.random.split(key)

    B = 8
    meta = jax.random.normal(k_data, (B, IN_DIM), jnp.float32)

    params = make_params(k_param)
    fused = fold_params(params)          # one-time constant fold

    x, y = tabular_forward(meta, fused)
    jax.block_until_ready((x, y))

    assert x.shape == (B, H2) and y.shape == (B, OUT_DIM)
    assert x.dtype == jnp.float32 and y.dtype == jnp.float32

    x_ref, y_ref = _ref_forward(meta, params)
    assert jnp.allclose(x, x_ref, atol=5e-2, rtol=5e-2)
    assert jnp.allclose(y, y_ref, atol=5e-2, rtol=5e-2)
    print("KERNEL_OK")
</pallas_src>

<mosaic_0001>
module attributes {stable_mosaic.version = 11 : i64} {
  func.func @tabular_kernel(%arg0: i32, %arg1: memref<8x3xf32, #tpu.memory_space<vmem>>, %arg2: memref<3x512xf32, #tpu.memory_space<vmem>>, %arg3: memref<1x512xf32, #tpu.memory_space<vmem>>, %arg4: memref<512x128xbf16, #tpu.memory_space<vmem>>, %arg5: memref<1x128xf32, #tpu.memory_space<vmem>>, %arg6: memref<128x128xbf16, #tpu.memory_space<vmem>>, %arg7: memref<1x128xf32, #tpu.memory_space<vmem>>, %arg8: memref<8x128xf32, #tpu.memory_space<vmem>>, %arg9: memref<8x2xf32, #tpu.memory_space<vmem>>) attributes {dimension_semantics = [#tpu.dimension_semantics<parallel>], iteration_bounds = array<i64: 1>, scalar_prefetch = 0 : i64, scratch_operands = 0 : i64, tpu.core_type = #tpu.core_type<tc>, window_params = [{transform_indices = @transform_0, window_bounds = array<i64: 8, 3>}, {pipeline_mode = #tpu.pipeline_mode<synchronous>, transform_indices = @transform_1, window_bounds = array<i64: 3, 512>}, {pipeline_mode = #tpu.pipeline_mode<synchronous>, transform_indices = @transform_2, window_bounds = array<i64: 1, 512>}, {pipeline_mode = #tpu.pipeline_mode<synchronous>, transform_indices = @transform_3, window_bounds = array<i64: 512, 128>}, {pipeline_mode = #tpu.pipeline_mode<synchronous>, transform_indices = @transform_4, window_bounds = array<i64: 1, 128>}, {pipeline_mode = #tpu.pipeline_mode<synchronous>, transform_indices = @transform_5, window_bounds = array<i64: 128, 128>}, {pipeline_mode = #tpu.pipeline_mode<synchronous>, transform_indices = @transform_6, window_bounds = array<i64: 1, 128>}, {transform_indices = @transform_7, window_bounds = array<i64: 8, 128>}, {transform_indices = @transform_8, window_bounds = array<i64: 8, 2>}]} {
    %c0 = arith.constant 0 : index
    %c0_0 = arith.constant 0 : index
    %0 = vector.load %arg1[%c0, %c0_0] : memref<8x3xf32, #tpu.memory_space<vmem>>, vector<8x3xf32>
    %c0_1 = arith.constant 0 : index
    %c0_2 = arith.constant 0 : index
    %1 = vector.load %arg2[%c0_1, %c0_2] : memref<3x512xf32, #tpu.memory_space<vmem>>, vector<3x512xf32>
    %c0_3 = arith.constant 0 : index
    %c0_4 = arith.constant 0 : index
    %2 = vector.load %arg3[%c0_3, %c0_4] : memref<1x512xf32, #tpu.memory_space<vmem>>, vector<1x512xf32>
    %3 = vector.extract_strided_slice %0 {offsets = [0, 0], sizes = [8, 1], strides = [1, 1]} : vector<8x3xf32> to vector<8x1xf32>
    %4 = vector.extract_strided_slice %1 {offsets = [0, 0], sizes = [1, 512], strides = [1, 1]} : vector<3x512xf32> to vector<1x512xf32>
    %5 = vector.broadcast %3 : vector<8x1xf32> to vector<8x512xf32>
    %6 = vector.broadcast %4 : vector<1x512xf32> to vector<8x512xf32>
    %7 = arith.mulf %5, %6 : vector<8x512xf32>
    %8 = vector.broadcast %2 : vector<1x512xf32> to vector<8x512xf32>
    %9 = arith.addf %8, %7 : vector<8x512xf32>
    %10 = vector.extract_strided_slice %0 {offsets = [0, 1], sizes = [8, 1], strides = [1, 1]} : vector<8x3xf32> to vector<8x1xf32>
    %11 = vector.extract_strided_slice %1 {offsets = [1, 0], sizes = [1, 512], strides = [1, 1]} : vector<3x512xf32> to vector<1x512xf32>
    %12 = vector.broadcast %10 : vector<8x1xf32> to vector<8x512xf32>
    %13 = vector.broadcast %11 : vector<1x512xf32> to vector<8x512xf32>
    %14 = arith.mulf %12, %13 : vector<8x512xf32>
    %15 = arith.addf %9, %14 : vector<8x512xf32>
    %16 = vector.extract_strided_slice %0 {offsets = [0, 2], sizes = [8, 1], strides = [1, 1]} : vector<8x3xf32> to vector<8x1xf32>
    %17 = vector.extract_strided_slice %1 {offsets = [2, 0], sizes = [1, 512], strides = [1, 1]} : vector<3x512xf32> to vector<1x512xf32>
    %18 = vector.broadcast %16 : vector<8x1xf32> to vector<8x512xf32>
    %19 = vector.broadcast %17 : vector<1x512xf32> to vector<8x512xf32>
    %20 = arith.mulf %18, %19 : vector<8x512xf32>
    %21 = arith.addf %15, %20 : vector<8x512xf32>
    %cst = arith.constant 5.000000e-01 : f32
    %22 = vector.broadcast %cst : f32 to vector<8x512xf32>
    %23 = arith.mulf %22, %21 : vector<8x512xf32>
    %24 = math.tanh %23 : vector<8x512xf32>
    %cst_5 = arith.constant 5.000000e-01 : f32
    %25 = vector.broadcast %cst_5 : f32 to vector<8x512xf32>
    %26 = arith.mulf %25, %24 : vector<8x512xf32>
    %cst_6 = arith.constant 5.000000e-01 : f32
    %27 = vector.broadcast %cst_6 : f32 to vector<8x512xf32>
    %28 = arith.addf %26, %27 : vector<8x512xf32>
    %29 = arith.mulf %21, %28 : vector<8x512xf32>
    %30 = arith.truncf %29 : vector<8x512xf32> to vector<8x512xbf16>
    %c0_7 = arith.constant 0 : index
    %c0_8 = arith.constant 0 : index
    %31 = vector.load %arg4[%c0_7, %c0_8] : memref<512x128xbf16, #tpu.memory_space<vmem>>, vector<512x128xbf16>
    %cst_9 = arith.constant dense<0.000000e+00> : vector<8x128xf32>
    %32 = tpu.matmul %30, %31, %cst_9 {dimension_numbers = #tpu.dot_dimension_numbers<[1], [0], [0], [1], [0, 0, 1, 1], [], []>} : vector<8x512xbf16>, vector<512x128xbf16>, vector<8x128xf32> -> vector<8x128xf32>
    %c0_10 = arith.constant 0 : index
    %c0_11 = arith.constant 0 : index
    %33 = vector.load %arg5[%c0_10, %c0_11] : memref<1x128xf32, #tpu.memory_space<vmem>>, vector<1x128xf32>
    %34 = vector.broadcast %33 : vector<1x128xf32> to vector<8x128xf32>
    %35 = arith.addf %32, %34 : vector<8x128xf32>
    %cst_12 = arith.constant 5.000000e-01 : f32
    %36 = vector.broadcast %cst_12 : f32 to vector<8x128xf32>
    %37 = arith.mulf %36, %35 : vector<8x128xf32>
    %38 = math.tanh %37 : vector<8x128xf32>
    %cst_13 = arith.constant 5.000000e-01 : f32
    %39 = vector.broadcast %cst_13 : f32 to vector<8x128xf32>
    %40 = arith.mulf %39, %38 : vector<8x128xf32>
    %cst_14 = arith.constant 5.000000e-01 : f32
    %41 = vector.broadcast %cst_14 : f32 to vector<8x128xf32>
    %42 = arith.addf %40, %41 : vector<8x128xf32>
    %43 = arith.mulf %35, %42 : vector<8x128xf32>
    %c0_15 = arith.constant 0 : index
    %c0_16 = arith.constant 0 : index
    %44 = vector.load %arg8[%c0_15, %c0_16] : memref<8x128xf32, #tpu.memory_space<vmem>>, vector<8x128xf32>
    tpu.vector_store %arg8[%c0_15, %c0_16], %43 {strides = array<i32>} : memref<8x128xf32, #tpu.memory_space<vmem>>, vector<8x128xf32>,
    %45 = arith.truncf %43 : vector<8x128xf32> to vector<8x128xbf16>
    %c0_17 = arith.constant 0 : index
    %c0_18 = arith.constant 0 : index
    %46 = vector.load %arg6[%c0_17, %c0_18] : memref<128x128xbf16, #tpu.memory_space<vmem>>, vector<128x128xbf16>
    %cst_19 = arith.constant dense<0.000000e+00> : vector<8x128xf32>
    %47 = tpu.matmul %45, %46, %cst_19 {dimension_numbers = #tpu.dot_dimension_numbers<[1], [0], [0], [1], [0, 0, 1, 1], [], []>} : vector<8x128xbf16>, vector<128x128xbf16>, vector<8x128xf32> -> vector<8x128xf32>
    %c0_20 = arith.constant 0 : index
    %c0_21 = arith.constant 0 : index
    %48 = vector.load %arg7[%c0_20, %c0_21] : memref<1x128xf32, #tpu.memory_space<vmem>>, vector<1x128xf32>
    %49 = vector.broadcast %48 : vector<1x128xf32> to vector<8x128xf32>
    %50 = arith.addf %47, %49 : vector<8x128xf32>
    %51 = vector.extract_strided_slice %50 {offsets = [0, 0], sizes = [8, 2], strides = [1, 1]} : vector<8x128xf32> to vector<8x2xf32>
    %c0_22 = arith.constant 0 : index
    %c0_23 = arith.constant 0 : index
    %52 = vector.load %arg9[%c0_22, %c0_23] : memref<8x2xf32, #tpu.memory_space<vmem>>, vector<8x2xf32>
    tpu.vector_store %arg9[%c0_22, %c0_23], %51 {strides = array<i32>} : memref<8x2xf32, #tpu.memory_space<vmem>>, vector<8x2xf32>,
    return
  }
  func.func @transform_0(%arg0: i32) -> (i32, i32) {
    %c0_i32 = arith.constant 0 : i32
    %c0_i32_0 = arith.constant 0 : i32
    return %arg0, %c0_i32 : i32, i32
  }
  func.func @transform_1(%arg0: i32) -> (i32, i32) {
    %c0_i32 = arith.constant 0 : i32
    %c0_i32_0 = arith.constant 0 : i32
    %c0_i32_1 = arith.constant 0 : i32
    return %c0_i32, %c0_i32_0 : i32, i32
  }
  func.func @transform_2(%arg0: i32) -> (i32, i32) {
    %c0_i32 = arith.constant 0 : i32
    %c0_i32_0 = arith.constant 0 : i32
    %c0_i32_1 = arith.constant 0 : i32
    return %c0_i32, %c0_i32_0 : i32, i32
  }
  func.func @transform_3(%arg0: i32) -> (i32, i32) {
    %c0_i32 = arith.constant 0 : i32
    %c0_i32_0 = arith.constant 0 : i32
    %c0_i32_1 = arith.constant 0 : i32
    return %c0_i32, %c0_i32_0 : i32, i32
  }
  func.func @transform_4(%arg0: i32) -> (i32, i32) {
    %c0_i32 = arith.constant 0 : i32
    %c0_i32_0 = arith.constant 0 : i32
    %c0_i32_1 = arith.constant 0 : i32
    return %c0_i32, %c0_i32_0 : i32, i32
  }
  func.func @transform_5(%arg0: i32) -> (i32, i32) {
    %c0_i32 = arith.constant 0 : i32
    %c0_i32_0 = arith.constant 0 : i32
    %c0_i32_1 = arith.constant 0 : i32
    return %c0_i32, %c0_i32_0 : i32, i32
  }
  func.func @transform_6(%arg0: i32) -> (i32, i32) {
    %c0_i32 = arith.constant 0 : i32
    %c0_i32_0 = arith.constant 0 : i32
    %c0_i32_1 = arith.constant 0 : i32
    return %c0_i32, %c0_i32_0 : i32, i32
  }
  func.func @transform_7(%arg0: i32) -> (i32, i32) {
    %c0_i32 = arith.constant 0 : i32
    %c0_i32_0 = arith.constant 0 : i32
    return %arg0, %c0_i32 : i32, i32
  }
  func.func @transform_8(%arg0: i32) -> (i32, i32) {
    %c0_i32 = arith.constant 0 : i32
    %c0_i32_0 = arith.constant 0 : i32
    return %arg0, %c0_i32 : i32, i32
  }
}

</mosaic_0001>

<bundles_post_ra>
// kernel: tpu_custom_call.1
= control target key start
LH: loop header
LB: loop body
LE: loop exit
PB: predicated region body
PF: predicated region fallthrough
CT: control target
= control target key end

     0   :  { %14 = vsyncpa [#allocation3], 0  ;;  %s1156_s0 = inlined_call_operand.vmem [shape: f32[8,3], index: 0, kind: input, shape index: {}]   ;;  %s1157_s1 = inlined_call_operand.hbm [shape: f32[3,512], index: 1, kind: input, shape index: {}]   ;;  %s1158_s2 = inlined_call_operand.vmem [shape: f32[1,512], index: 2, kind: input, shape index: {}]   ;;  %s1159_s3 = inlined_call_operand.hbm [shape: bf16[512,128], index: 3, kind: input, shape index: {}]   ;;  %s1160_s4 = inlined_call_operand.vmem [shape: f32[1,128], index: 4, kind: input, shape index: {}]   ;;  %s1161_s5 = inlined_call_operand.hbm [shape: bf16[128,128], index: 5, kind: input, shape index: {}]   ;;  %s1162_s6 = inlined_call_operand.vmem [shape: f32[1,128], index: 6, kind: input, shape index: {}]   ;;  %s1163_s7 = inlined_call_operand.hbm [shape: f32[8,128], index: 7, kind: output, shape index: {0}]   ;;  %s1164_s8 = inlined_call_operand.vmem [shape: f32[8,2], index: 8, kind: output, shape index: {1}]  }
   0x1   :  { %15 = vsyncpa [#allocation6], 0 }
   0x2   :  { %16 = vsyncpa [#allocation4], 0  ;;  %s1022_s27 = smov [#allocation5]   ;;  %s928_s9 = scalar_lea.hbm %s1159_s3, 4096 }
   0x3   :  { %s36_s28 = sshll.u32 %s1022_s27, 4  ;;  %p929_p0 = scmp.ne.s32.totalorder %s1159_s3, %s928_s9  ;;  %s37_s28 = int_to_ptr.vmem [resolvable:$true] %s36_s28 }
   0x4   :  { %p932_p1 = scmp.lt.u32.totalorder %s928_s9, %s1159_s3 }
   0x6   :  { %p934_p2 = pnand %p932_p1, %p929_p0 }
   0x8   :  { %937 = shalt.err (!%p934_p2)
}
   0x9   :  { %s938_s14 = scalar_lea.vmem %s37_s28, 4096  ;;  %p943_p4 = scmp.lt.s32.totalorder %s37_s28, %s37_s28 }
   0xa   :  { %p939_p3 = scmp.ne.s32.totalorder %s37_s28, %s938_s14  ;;  %p944_p5 = scmp.lt.s32.totalorder %s938_s14, %s938_s14 }
   0xc   :  { %p945_p6 = por %p944_p5, %p943_p4 }
   0xe   :  { %p946_p7 = pnand %p945_p6, %p939_p3 }
  0x10   :  { %949 = shalt.err (!%p946_p7)
}
  0x11   :  { %s1023_s15 = smov 64   ;;  %s1024_s16 = smov 4  }
  0x12   :  { %42 = dma.hbm_to_vmem [thread:$0]  %s1159_s3, 4096, %s37_s28, [#allocation6], %s1023_s15, %s1023_s15, %s1024_s16  }
  0x13   :  { %s1025_s19 = smov [#allocation2]   ;;  %s1026_s21 = smov [#allocation7]  }
  0x14   :  { %s25_s20 = sshll.u32 %s1025_s19, 4  ;;  %s50_s22 = sshll.u32 %s1026_s21, 4  ;;  %s26_s20 = int_to_ptr.vmem [resolvable:$true] %s25_s20  ;;  %s51_s22 = int_to_ptr.vmem [resolvable:$true] %s50_s22 }
  0x15   :  { %s950_s25 = scalar_lea.hbm %s1157_s1, 256 }
  0x16   :  { %p951_p8 = scmp.ne.s32.totalorder %s1157_s1, %s950_s25  ;;  %p954_p9 = scmp.lt.u32.totalorder %s950_s25, %s1157_s1 }
  0x18   :  { %p956_p10 = pnand %p954_p9, %p951_p8 }
  0x1a   :  { %959 = shalt.err (!%p956_p10)
}
  0x1b   :  { %s960_s3 = scalar_lea.vmem %s26_s20, 256  ;;  %p965_p12 = scmp.lt.s32.totalorder %s26_s20, %s26_s20 }
  0x1c   :  { %p961_p11 = scmp.ne.s32.totalorder %s26_s20, %s960_s3  ;;  %p966_p13 = scmp.lt.s32.totalorder %s960_s3, %s960_s3 }
  0x1e   :  { %p967_p0 = por %p966_p13, %p965_p12 }
  0x20   :  { %p968_p1 = pnand %p967_p0, %p961_p11 }
  0x22   :  { %971 = shalt.err (!%p968_p1)
}
  0x23   :  { %28 = dma.hbm_to_vmem [thread:$0]  %s1157_s1, 256, %s26_s20, [#allocation3]  }
  0x24   :  { %s972_s12 = scalar_lea.hbm %s1161_s5, 1024 }
  0x25   :  { %p973_p2 = scmp.ne.s32.totalorder %s1161_s5, %s972_s12  ;;  %p976_p3 = scmp.lt.u32.totalorder %s972_s12, %s1161_s5 }
  0x27   :  { %p978_p4 = pnand %p976_p3, %p973_p2 }
  0x29   :  { %981 = shalt.err (!%p978_p4)
}
  0x2a   :  { %s982_s19 = scalar_lea.vmem %s51_s22, 1024  ;;  %p987_p6 = scmp.lt.s32.totalorder %s51_s22, %s51_s22 }
  0x2b   :  { %p983_p5 = scmp.ne.s32.totalorder %s51_s22, %s982_s19  ;;  %p988_p7 = scmp.lt.s32.totalorder %s982_s19, %s982_s19 }
  0x2d   :  { %p989_p8 = por %p988_p7, %p987_p6 }
  0x2f   :  { %p990_p9 = pnand %p989_p8, %p983_p5 }
  0x31   :  { %993 = shalt.err (!%p990_p9)
}
  0x32   :  { %56 = dma.hbm_to_vmem [thread:$0]  %s1161_s5, 1024, %s51_s22, [#allocation6], %s1023_s15, %s1023_s15, %s1024_s16  }
  0x33   :  { %1016 = dma.done.wait [#allocation3], 256  }
  0x34   :  { %1017 = vsyncadd [#allocation3], 4294967040 }
  0x35   :  { %1018 = dma.done.wait [#allocation6], 5120  }
  0x36   :  { %1019 = vsyncadd [#allocation6], 4294962176  ;;  %v1027_v0 = vmov 0   ;;  %v1028_v1 = vmov 2   ;;  %v69_v2 = vld [vmem:[%s1156_s0] sm:$0xff]  ;;  %v878_v3 = vld [vmem:[#allocation5 + $0x40] sm:$0xff]   ;;  %v80_v37 = vlaneseq }
  0x37   :  { %874 = vset.pattern.permute.xlu0 %v1027_v0  ;;  %876 = vset.pattern.permute.xlu1 %v1028_v1  ;;  %v879_v4 = vld [vmem:[#allocation5 + $0xc0] sm:$0xff]   ;;  %v1029_v7 = vmov 1   ;;  %v882_v8 = vld [vmem:[#allocation5 + $0x48] sm:$0xff]   ;;  %v886_v12 = vld [vmem:[#allocation5 + $0x50] sm:$0xff]   ;;  %v1030_v36 = vmov 0.0   ;;  %vm1031_vm0 = vmmov 0  }
  0x38   :  { %75 = vperm.xlu0 %874, %v69_v2   ;;  %194 = vperm.xlu1 %876, %v69_v2   ;;  %v880_v5 = vld [vmem:[#allocation5] sm:$0xff]   ;;  %v883_v9 = vld [vmem:[#allocation5 + $0xc8] sm:$0xff]   ;;  %v887_v13 = vld [vmem:[#allocation5 + $0xd0] sm:$0xff]   ;;  %v81_v38 = vshrl.u32 %v80_v37, 7 }
  0x39   :  { %790 = vmatprep.subr.bf16.mxu0 %v878_v3  ;;  %812 = vmatprep.subr.bf16.mxu1 %v879_v4  ;;  %v881_v6 = vld [vmem:[#allocation5 + $0x80] sm:$0xff]   ;;  %v884_v10 = vld [vmem:[#allocation5 + $0x8] sm:$0xff]   ;;  %v888_v14 = vld [vmem:[#allocation5 + $0x10] sm:$0xff]  }
  0x3a   :  { %791 = vmatpush3.bf16.msra.mxu0 %v880_v5  ;;  %813 = vmatpush3.bf16.msra.mxu1 %v881_v6  ;;  %v885_v11 = vld [vmem:[#allocation5 + $0x88] sm:$0xff]   ;;  %v889_v15 = vld [vmem:[#allocation5 + $0x90] sm:$0xff]   ;;  %v890_v16 = vld [vmem:[#allocation5 + $0x58] sm:$0xff]   ;;  %v82_v39 = vsub.s32 0, %v81_v38  ;;  %v86_v40 = vsub.s32 4, %v81_v38  ;;  %v131_v43 = vsub.s32 2, %v81_v38 }
  0x3b   :  { %792 = vmatprep.subr.bf16.mxu0 %v882_v8  ;;  %814 = vmatprep.subr.bf16.mxu1 %v883_v9  ;;  %v891_v17 = vld [vmem:[#allocation5 + $0xd8] sm:$0xff]   ;;  %v894_v20 = vld [vmem:[#allocation5 + $0x60] sm:$0xff]   ;;  %v898_v24 = vld [vmem:[#allocation5 + $0x68] sm:$0xff]   ;;  %v203_v44 = vsub.s32 6, %v81_v38  ;;  %v127_v49 = vsub.s32 1, %v81_v38  ;;  %v155_v50 = vsub.s32 5, %v81_v38 }
  0x3c   :  { %875 = vset.pattern.permute.xlu0 %v1029_v7  ;;  %v892_v18 = vld [vmem:[#allocation5 + $0x18] sm:$0xff]   ;;  %v895_v21 = vld [vmem:[#allocation5 + $0xe0] sm:$0xff]   ;;  %v899_v25 = vld [vmem:[#allocation5 + $0xe8] sm:$0xff]   ;;  %v135_v56 = vsub.s32 3, %v81_v38 }
  0x3d   :  { %146 = vperm.xlu0 %875, %v69_v2   ;;  %v893_v19 = vld [vmem:[#allocation5 + $0x98] sm:$0xff]   ;;  %v896_v22 = vld [vmem:[#allocation5 + $0x20] sm:$0xff]   ;;  %v900_v26 = vld [vmem:[#allocation5 + $0x28] sm:$0xff]  }
  0x3e   :  { %793 = vmatpush3.bf16.msra.mxu0 %v884_v10  ;;  %815 = vmatpush3.bf16.msra.mxu1 %v885_v11  ;;  %v897_v23 = vld [vmem:[#allocation5 + $0xa0] sm:$0xff]   ;;  %v901_v27 = vld [vmem:[#allocation5 + $0xa8] sm:$0xff]   ;;  %v902_v28 = vld [vmem:[#allocation5 + $0x70] sm:$0xff]  }
  0x3f   :  { %794 = vmatprep.subr.bf16.mxu0 %v886_v12  ;;  %816 = vmatprep.subr.bf16.mxu1 %v887_v13  ;;  %v903_v29 = vld [vmem:[#allocation5 + $0xf0] sm:$0xff]   ;;  %v906_v32 = vld [vmem:[#allocation5 + $0x78] sm:$0xff]  }
  0x40   :  { %v904_v30 = vld [vmem:[#allocation5 + $0x30] sm:$0xff]   ;;  %v907_v33 = vld [vmem:[#allocation5 + $0xf8] sm:$0xff]  }
  0x41   :  { %877 = vset.pattern.permute.xlu0 %v1028_v1  ;;  %v905_v31 = vld [vmem:[#allocation5 + $0xb0] sm:$0xff]   ;;  %v908_v34 = vld [vmem:[#allocation5 + $0x38] sm:$0xff]  }
  0x42   :  { %795 = vmatpush3.bf16.msra.mxu0 %v888_v14  ;;  %817 = vmatpush3.bf16.msra.mxu1 %v889_v15  ;;  %v909_v35 = vld [vmem:[#allocation5 + $0xb8] sm:$0xff]   ;;  %v70_v41 = vld [vmem:[#allocation2] sm:$0x77] }
  0x43   :  { %796 = vmatprep.subr.bf16.mxu0 %v890_v16  ;;  %818 = vmatprep.subr.bf16.mxu1 %v891_v17  ;;  %v71_v42 = vld [vmem:[#allocation2 + $0x8] sm:$0x77]  ;;  %v83_v45 = vrot.slane %v70_v41, %v82_v39  ;;  %v87_v46 = vrot.slane %v70_v41, %v86_v40  ;;  %v200_v51 = vrot.slane %v70_v41, %v131_v43  ;;  %v72_v52 = vld [vmem:[%s1158_s2] sm:$0xf] }
  0x44   :  { %v91_v47 = vrot.slane %v71_v42, %v82_v39  ;;  %v95_v48 = vrot.slane %v71_v42, %v86_v40  ;;  %v204_v53 = vrot.slane %v70_v41, %v203_v44  ;;  %v208_v54 = vrot.slane %v71_v42, %v131_v43 }
  0x45   :  { %v212_v55 = vrot.slane %v71_v42, %v203_v44  ;;  %v103_v57 = vrot.slane %v83_v45, %v82_v39  ;;  %v107_v58 = vrot.slane %v87_v46, %v82_v39  ;;  %v152_v61 = vrot.slane %v70_v41, %v127_v49 }
  0x46   :  { %797 = vmatpush3.bf16.msra.mxu0 %v892_v18  ;;  %819 = vmatpush3.bf16.msra.mxu1 %v893_v19  ;;  %v111_v59 = vrot.slane %v91_v47, %v82_v39  ;;  %v115_v60 = vrot.slane %v95_v48, %v82_v39  ;;  %v156_v62 = vrot.slane %v70_v41, %v155_v50 }
  0x47   :  { %798 = vmatprep.subr.bf16.mxu0 %v894_v20  ;;  %820 = vmatprep.subr.bf16.mxu1 %v895_v21  ;;  %v160_v63 = vrot.slane %v71_v42, %v127_v49  ;;  %v164_v0 = vrot.slane %v71_v42, %v155_v50  ;;  %v124_v1 = vrot.slane %v72_v52, %v82_v39 }
  0x48   :  { %v132_v2 = vrot.slane %v72_v52, %v131_v43  ;;  %v220_v3 = vrot.slane %v200_v51, %v131_v43  ;;  %v128_v4 = vrot.slane %v72_v52, %v127_v49  ;;  %v224_v6 = vrot.slane %v204_v53, %v131_v43 }
  0x49   :  { %v228_v7 = vrot.slane %v208_v54, %v131_v43  ;;  %v232_v8 = vrot.slane %v212_v55, %v131_v43  ;;  %v136_v9 = vrot.slane %v72_v52, %v135_v56  ;;  %v172_v15 = vrot.slane %v152_v61, %v127_v49 }
  0x4a   :  { %799 = vmatpush3.bf16.msra.mxu0 %v896_v22  ;;  %821 = vmatpush3.bf16.msra.mxu1 %v897_v23  ;;  %v176_v16 = vrot.slane %v156_v62, %v127_v49  ;;  %v180_v17 = vrot.slane %v160_v63, %v127_v49  ;;  %v184_v18 = vrot.slane %v164_v0, %v127_v49  ;;  %v910_v0 = vld [vmem:[#allocation7] sm:$0xff]  }
  0x4b   :  { %800 = vmatprep.subr.bf16.mxu0 %v898_v24  ;;  %822 = vmatprep.subr.bf16.mxu1 %v899_v25 }
  0x4e   :  { %801 = vmatpush3.bf16.msra.mxu0 %v900_v26  ;;  %823 = vmatpush3.bf16.msra.mxu1 %v901_v27 }
  0x4f   :  { %802 = vmatprep.subr.bf16.mxu0 %v902_v28  ;;  %824 = vmatprep.subr.bf16.mxu1 %v903_v29 }
  0x52   :  { %803 = vmatpush3.bf16.msra.mxu0 %v904_v30  ;;  %825 = vmatpush3.bf16.msra.mxu1 %v905_v31 }
  0x53   :  { %804 = vmatprep.subr.bf16.mxu0 %v906_v32  ;;  %826 = vmatprep.subr.bf16.mxu1 %v907_v33 }
  0x56   :  { %805 = vmatpush3.bf16.msra.mxu0 %v908_v34  ;;  %827 = vmatpush3.bf16.msra.mxu1 %v909_v35 }
  0x57   :  { %843 = vmatprep.subr.bf16.mxu0 %v1030_v36 }
  0xb7   :  { %v76_v5 = vpop.permute.xlu0 %75  ;;  %v195_v14 = vpop.permute.xlu1 %194 }
  0xb8   :  { %v116_v10 = vmul.f32 %v103_v57, %v76_v5  ;;  %v117_v11 = vmul.f32 %v107_v58, %v76_v5  ;;  %v118_v12 = vmul.f32 %v111_v59, %v76_v5  ;;  %v119_v13 = vmul.f32 %v115_v60, %v76_v5  ;;  %v914_v5 = vld [vmem:[#allocation7 + $0x20] sm:$0xff]  }
  0xb9   :  { %v233_v19 = vmul.f32 %v220_v3, %v195_v14  ;;  %v234_v20 = vmul.f32 %v224_v6, %v195_v14  ;;  %v235_v21 = vmul.f32 %v228_v7, %v195_v14  ;;  %v236_v22 = vmul.f32 %v232_v8, %v195_v14  ;;  %v912_v3 = vld [vmem:[#allocation7 + $0x10] sm:$0xff]   ;;  %v915_v6 = vld [vmem:[#allocation7 + $0x28] sm:$0xff]   ;;  %v917_v8 = vld [vmem:[#allocation7 + $0x38] sm:$0xff]  }
  0xba   :  { %v141_v23 = vadd.f32 %v124_v1, %v116_v10  ;;  %v143_v24 = vadd.f32 %v132_v2, %v118_v12  ;;  %v142_v26 = vadd.f32 %v128_v4, %v117_v11  ;;  %v144_v27 = vadd.f32 %v136_v9, %v119_v13  ;;  %v911_v2 = vld [vmem:[#allocation7 + $0x8] sm:$0xff]   ;;  %v913_v4 = vld [vmem:[#allocation7 + $0x18] sm:$0xff]   ;;  %v916_v7 = vld [vmem:[#allocation7 + $0x30] sm:$0xff]  }
  0xbb   :  { %v748_v11 = vld [vmem:[%s1160_s4] ss:$0 sm:$0xff]  ;;  %s1032_s4 = smov [#allocation8]  }
  0xbc   :  { %v147_v25 = vpop.permute.xlu0 %146  ;;  %s734_s16 = sshll.u32 %s1032_s4, 4  ;;  %s735_s16 = int_to_ptr.vmem [resolvable:$true] %s734_s16 }
  0xbd   :  { %v185_v28 = vmul.f32 %v172_v15, %v147_v25  ;;  %v186_v29 = vmul.f32 %v176_v16, %v147_v25  ;;  %v187_v30 = vmul.f32 %v180_v17, %v147_v25  ;;  %v188_v31 = vmul.f32 %v184_v18, %v147_v25  ;;  %s994_s22 = scalar_lea.vmem %s735_s16, 128  ;;  %p999_p11 = scmp.lt.s32.totalorder %s735_s16, %s735_s16 }
  0xbe   :  { %p995_p10 = scmp.ne.s32.totalorder %s735_s16, %s994_s22  ;;  %p1000_p12 = scmp.lt.s32.totalorder %s994_s22, %s994_s22 }
  0xbf   :  { %v189_v32 = vadd.f32 %v185_v28, %v141_v23  ;;  %v191_v33 = vadd.f32 %v187_v30, %v143_v24  ;;  %v190_v34 = vadd.f32 %v186_v29, %v142_v26  ;;  %v192_v35 = vadd.f32 %v188_v31, %v144_v27 }
  0xc0   :  { %p1001_p13 = por %p1000_p12, %p999_p11 }
  0xc1   :  { %v237_v37 = vadd.f32 %v233_v19, %v189_v32  ;;  %v239_v38 = vadd.f32 %v235_v21, %v191_v33  ;;  %v238_v39 = vadd.f32 %v234_v20, %v190_v34  ;;  %v240_v40 = vadd.f32 %v236_v22, %v192_v35 }
  0xc2   :  { %p1002_p0 = pnand %p1001_p13, %p995_p10 }
  0xc3   :  { %v241_v41 = vmul.f32 0.5, %v237_v37  ;;  %v243_v42 = vmul.f32 0.5, %v239_v38  ;;  %v242_v43 = vmul.f32 0.5, %v238_v39  ;;  %v244_v44 = vmul.f32 0.5, %v240_v40 }
  0xc5   :  { %918 = vtanh.f32 %v241_v41 }
  0xc6   :  { %920 = vtanh.f32 %v243_v42 }
  0xc7   :  { %922 = vtanh.f32 %v242_v43 }
  0xc8   :  { %924 = vtanh.f32 %v244_v44 }
  0xcf   :  { %v919_v45 = vpop.eup %918 }
  0xd0   :  { %v921_v46 = vpop.eup %920  ;;  %v249_v47 = vmul.f32 0.5, %v919_v45 }
  0xd1   :  { %v923_v48 = vpop.eup %922  ;;  %v251_v49 = vmul.f32 0.5, %v921_v46 }
  0xd2   :  { %v925_v50 = vpop.eup %924  ;;  %v250_v51 = vmul.f32 0.5, %v923_v48  ;;  %v253_v52 = vadd.f32 0.5, %v249_v47 }
  0xd3   :  { %v252_v53 = vmul.f32 0.5, %v925_v50  ;;  %v255_v54 = vadd.f32 0.5, %v251_v49 }
  0xd4   :  { %v254_v55 = vadd.f32 0.5, %v250_v51  ;;  %v257_v56 = vmul.f32 %v253_v52, %v237_v37 }
  0xd5   :  { %v256_v57 = vadd.f32 0.5, %v252_v53  ;;  %v259_v58 = vmul.f32 %v255_v54, %v239_v38 }
  0xd6   :  { %v258_v59 = vmul.f32 %v254_v55, %v238_v39  ;;  %v261_v61 = vpack.c.bf16 %v257_v56, %v257_v56 }
  0xd7   :  { %v260_v60 = vmul.f32 %v256_v57, %v240_v40  ;;  %v263_v63 = vpack.c.bf16 %v259_v58, %v259_v58 }
  0xd8   :  { %v262_v62 = vpack.c.bf16 %v258_v59, %v258_v59 }
  0xd9   :  { %v264_v1 = vpack.c.bf16 %v260_v60, %v260_v60 }
  0xda   :  { %560 = vmatprep.mubr.bf16.mxu0 %v262_v62 }
  0xdb   :  { %600 = vmatprep.mubr.bf16.mxu1 %v264_v1  ;;  %561 = vmatmul.mubr.bf16.vlgmr.msra.gmra.mrb[0].mxu0 %v261_v61 }
  0xdc   :  { %601 = vmatmul.mubr.bf16.vlgmr.msra.gmra.mrb[0].mxu1 %v263_v63  ;;  %844 = vmatpush3.bf16.msra.mxu0 %v910_v0 }
  0xdd   :  { %845 = vmatprep.subr.bf16.mxu0 %v1030_v36  ;;  %859 = vmatprep.mubr.msk.bf16.mxu0 %vm1031_vm0, %v1030_v36 }
  0xe0   :  { %846 = vmatpush3.bf16.msra.mxu0 %v911_v2 }
  0xe1   :  { %847 = vmatprep.subr.bf16.mxu0 %v1030_v36 }
  0xe4   :  { %848 = vmatpush3.bf16.msra.mxu0 %v912_v3 }
  0xe5   :  { %849 = vmatprep.subr.bf16.mxu0 %v1030_v36 }
  0xe8   :  { %850 = vmatpush3.bf16.msra.mxu0 %v913_v4 }
  0xe9   :  { %851 = vmatprep.subr.bf16.mxu0 %v1030_v36 }
  0xec   :  { %852 = vmatpush3.bf16.msra.mxu0 %v914_v5 }
  0xed   :  { %853 = vmatprep.subr.bf16.mxu0 %v1030_v36 }
  0xf0   :  { %854 = vmatpush3.bf16.msra.mxu0 %v915_v6 }
  0xf1   :  { %855 = vmatprep.subr.bf16.mxu0 %v1030_v36 }
  0xf4   :  { %856 = vmatpush3.bf16.msra.mxu0 %v916_v7 }
  0xf5   :  { %857 = vmatprep.subr.bf16.mxu0 %v1030_v36 }
  0xf8   :  { %858 = vmatpush3.bf16.msra.mxu0 %v917_v8 }
 0x1ae   :  { %v806_v9 = vpop.f32.mrb[0].mxu0 }
 0x1af   :  { %v828_v10 = vpop.f32.mrb[0].mxu1  ;;  %v807_v12 = vpop.f32.mrb[1].mxu0 }
 0x1b0   :  { %v808_v13 = vadd.f32 %v807_v12, %v806_v9  ;;  %v829_v14 = vpop.f32.mrb[1].mxu1  ;;  %v809_v15 = vpop.f32.mrb[2].mxu0 }
 0x1b1   :  { %v830_v16 = vadd.f32 %v829_v14, %v828_v10  ;;  %v831_v17 = vpop.f32.mrb[2].mxu1  ;;  %v810_v18 = vpop.f32.mrb[3].mxu0 }
 0x1b2   :  { %v563_v19 = vadd.f32 %v808_v13, %v748_v11  ;;  %v832_v20 = vpop.f32.mrb[3].mxu1 }
 0x1b4   :  { %v603_v21 = vadd.f32 %v830_v16, %v563_v19 }
 0x1b6   :  { %v608_v22 = vmul.f32 0.5, %v603_v21 }
 0x1b8   :  { %926 = vtanh.f32 %v608_v22 }
 0x1c2   :  { %v927_v23 = vpop.eup %926 }
 0x1c3   :  { %v610_v36 = vmul.f32 0.5, %v927_v23 }
 0x1c5   :  { %v611_v24 = vadd.f32 0.5, %v610_v36 }
 0x1c7   :  { %v612_v25 = vmul.f32 %v611_v24, %v603_v21 }
 0x1c9   :  { %v614_v26 = vpack.c.bf16 %v612_v25, %v612_v25  ;;  %613 = vst [vmem:[#allocation8] sm:$0xff] %v612_v25 }
 0x1cb   :  { %860 = vmatmul.mubr.bf16.vlgmr.msra.gmra.mrb[4].mxu0 %v614_v26 }
 0x1cc   :  { %1005 = shalt.err (!%p1002_p0)
}
 0x1cd   :  { %s1006_s26 = scalar_lea.hbm %s1163_s7, 128 }
 0x1ce   :  { %p1007_p1 = scmp.ne.s32.totalorder %s1163_s7, %s1006_s26  ;;  %p1010_p2 = scmp.lt.u32.totalorder %s1006_s26, %s1163_s7 }
 0x1d0   :  { %p1012_p3 = pnand %p1010_p2, %p1007_p1 }
 0x1d2   :  { %1015 = shalt.err (!%p1012_p3)
}
 0x1d3   :  { %737 = dma.vmem_to_hbm [thread:$0]  %s735_s16, 128, %s1163_s7, [#allocation4]   ;;  %v781_v27 = vld [vmem:[%s1162_s6] ss:$0 sm:$0xff]  ;;  %vm726_vm1 = vcmask 15360  }
 0x29e   :  { %v720_v28 = vpop.f32.mrb[4].mxu0 }
 0x29f   :  { %v721_v29 = vadd.f32 %v781_v27, %v720_v28  ;;  %v861_v30 = vpop.f32.mrb[5].mxu0 }
 0x2a0   :  { %v723_v31 = vpop.f32.mrb[6].mxu0 }
 0x2a1   :  { %727 = vst.msk [vmem:[%s1164_s8] sm:$0xff] %vm726_vm1, %v721_v29  ;;  %v862_v32 = vpop.f32.mrb[7].mxu0 }
 0x2a2   :  { %1020 = dma.done.wait [#allocation4], 128  }
 0x2a3   :  { %1021 = vsyncadd [#allocation4], 4294967168 }
 0x2a4   :  { %745 = vsyncpa [#allocation3], 1 }
 0x2a5   :  { %746 = vsyncpa [#allocation6], 1 }
 0x2a6   :  { %747 = vsyncpa [#allocation4], 1 }

</bundles_post_ra>
